<compile_context>
chip_gen: v7x
topology: tpu7x:2x2x1
jax: 0.10.0
libtpu: 0.0.40
codegen_flags: <defaults>
</compile_context>

<pallas_src>
import functools

import jax
import jax.numpy as jnp
from jax.experimental import pallas as pl
from jax.experimental.pallas import tpu as pltpu

_EPS = 1e-5
_WORKSET_BUDGET = 32 * 1024 * 1024   # target VMEM working set (buffers + temps)
_VMEM_LIMIT = 48 * 1024 * 1024       # scoped VMEM limit: safe on v5e/v6e (128 MiB) and v7x (64 MiB)


def _sum_bn(x):
    """(B_grp, g, n) -> (1, g, 1): reduce lanes first (XLU), then the small batch axis."""
    s = jnp.sum(x, axis=2, keepdims=True)
    return jnp.sum(s, axis=0, keepdims=True)


# ---------------------------------------------------------------------------
# Fused single-pass kernel: whole group-rows resident in VMEM.
# ---------------------------------------------------------------------------
def _fused_norm_kernel(x_ref, o_ref, *, inv_count, eps):
    x = x_ref[...].astype(jnp.float32)                 # (B_grp, g_tile, N)
    mean = _sum_bn(x) * inv_count
    xc = x - mean
    var = _sum_bn(xc * xc) * inv_count                 # biased, like torch
    inv = jax.lax.rsqrt(var + eps)                     # EUP slot, ~free
    o_ref[...] = (xc * inv).astype(o_ref.dtype)


# ---------------------------------------------------------------------------
# Chunked-N path, pass 1: per-group sum / sum-of-squares -> mean, rstd.
# ---------------------------------------------------------------------------
def _stats_kernel(x_ref, mean_ref, rstd_ref, sum_ref, sq_ref, *,
                  n_total, n_tile, inv_count, eps):
    ni = pl.program_id(1)

    @pl.when(ni == 0)
    def _():
        sum_ref[...] = jnp.zeros_like(sum_ref)
        sq_ref[...] = jnp.zeros_like(sq_ref)

    x = x_ref[...].astype(jnp.float32)                 # (B_grp, g_tile, n_tile)
    if n_total % n_tile != 0:
        # mask the out-of-bounds columns of the partial last N-chunk
        col = jax.lax.broadcasted_iota(jnp.int32, (1, 1, n_tile), 2)
        valid = (ni * n_tile + col) < n_total
        x = jnp.where(valid, x, 0.0)

    sum_ref[...] += _sum_bn(x)
    sq_ref[...] += _sum_bn(x * x)

    @pl.when(ni == pl.num_programs(1) - 1)
    def _():
        m = sum_ref[...] * inv_count
        v = sq_ref[...] * inv_count - m * m
        v = jnp.maximum(v, 0.0)
        mean_ref[...] = m
        rstd_ref[...] = jax.lax.rsqrt(v + eps)


# ---------------------------------------------------------------------------
# Chunked-N path, pass 2: normalize with precomputed per-group mean / rstd.
# ---------------------------------------------------------------------------
def _apply_norm_kernel(x_ref, mean_ref, rstd_ref, o_ref):
    x = x_ref[...].astype(jnp.float32)
    o_ref[...] = ((x - mean_ref[...]) * rstd_ref[...]).astype(o_ref.dtype)


# ---------------------------------------------------------------------------
# Tile-size selection (VMEM working-set aware).
# ---------------------------------------------------------------------------
def _pick_g_tile(b_grp, g, n, itemsize, budget):
    """Rows per block for the single-pass kernel; 0 if even 8 rows don't fit."""
    row_bytes = b_grp * n * itemsize
    # pipelined working set: 2x input + 2x output double buffers + ~2 fp32 block temporaries
    workset_per_row = 4 * row_bytes + 2 * b_grp * n * 4
    max_rows = budget // workset_per_row
    if max_rows >= g:
        if g >= 16:
            # split into >=2 grid steps: both v7x TensorCores get work, DMA overlaps compute
            return max(8, ((g // 2) // 8) * 8)
        return g                                   # block = full G (allowed for any G)
    max_rows = (max_rows // 8) * 8
    if max_rows < 8:
        return 0                                   # fall back to chunked-N two-pass path
    return max_rows


def _pick_chunked_tiles(b_grp, g, n, itemsize, budget):
    g_tile = g if g < 8 else 8
    per_elem = 4 * itemsize + 8                    # 2x in + 2x out buffers + fp32 temps
    n_tile = budget // (b_grp * g_tile * per_elem)
    if n_tile >= n:
        return g_tile, n
    n_tile = (n_tile // 128) * 128
    if n_tile < 128:
        n_tile = min(128, n)
    # TODO(synk): if even (B_grp, g_tile, 128) exceeds VMEM (huge B), the batch axis would
    # also need to become a reduction grid axis.
    return g_tile, min(n_tile, n)


# ---------------------------------------------------------------------------
# Driver: normalize each group g of x3d[(B_grp, G, N)] over axes (0, 2).
# ---------------------------------------------------------------------------
def _grouped_norm(x3d, eps=_EPS, workset_budget=_WORKSET_BUDGET):
    b_grp, g, n = x3d.shape
    count = b_grp * n
    itemsize = x3d.dtype.itemsize
    compiler_params = dict(vmem_limit_bytes=_VMEM_LIMIT)

    g_tile = _pick_g_tile(b_grp, g, n, itemsize, workset_budget)

    if g_tile > 0:
        # ---- fused single pass: one HBM read + one HBM write ----
        return pl.pallas_call(
            functools.partial(_fused_norm_kernel, inv_count=1.0 / count, eps=eps),
            out_shape=jax.ShapeDtypeStruct((b_grp, g, n), x3d.dtype),
            grid_spec=pltpu.PrefetchScalarGridSpec(
                num_scalar_prefetch=0,
                grid=(pl.cdiv(g, g_tile),),
                in_specs=[pl.BlockSpec((b_grp, g_tile, n), lambda i: (0, i, 0))],
                out_specs=pl.BlockSpec((b_grp, g_tile, n), lambda i: (0, i, 0)),
            ),
            compiler_params=pltpu.CompilerParams(
                dimension_semantics=("parallel",), **compiler_params),
        )(x3d)

    # ---- chunked-N two-pass path (rows larger than VMEM) ----
    g_tile, n_tile = _pick_chunked_tiles(b_grp, g, n, itemsize, workset_budget)
    g_blocks = pl.cdiv(g, g_tile)
    n_blocks = pl.cdiv(n, n_tile)

    mean, rstd = pl.pallas_call(
        functools.partial(_stats_kernel, n_total=n, n_tile=n_tile,
                          inv_count=1.0 / count, eps=eps),
        out_shape=(jax.ShapeDtypeStruct((1, g, 1), jnp.float32),
                   jax.ShapeDtypeStruct((1, g, 1), jnp.float32)),
        grid_spec=pltpu.PrefetchScalarGridSpec(
            num_scalar_prefetch=0,
            grid=(g_blocks, n_blocks),
            in_specs=[pl.BlockSpec((b_grp, g_tile, n_tile), lambda i, j: (0, i, j))],
            out_specs=(pl.BlockSpec((1, g_tile, 1), lambda i, j: (0, i, 0)),
                       pl.BlockSpec((1, g_tile, 1), lambda i, j: (0, i, 0))),
            scratch_shapes=[pltpu.VMEM((1, g_tile, 1), jnp.float32),
                            pltpu.VMEM((1, g_tile, 1), jnp.float32)],
        ),
        compiler_params=pltpu.CompilerParams(
            dimension_semantics=("parallel", "arbitrary"), **compiler_params),
    )(x3d)

    return pl.pallas_call(
        _apply_norm_kernel,
        out_shape=jax.ShapeDtypeStruct((b_grp, g, n), x3d.dtype),
        grid_spec=pltpu.PrefetchScalarGridSpec(
            num_scalar_prefetch=0,
            grid=(g_blocks, n_blocks),
            in_specs=[pl.BlockSpec((b_grp, g_tile, n_tile), lambda i, j: (0, i, j)),
                      pl.BlockSpec((1, g_tile, 1), lambda i, j: (0, i, 0)),
                      pl.BlockSpec((1, g_tile, 1), lambda i, j: (0, i, 0))],
            out_specs=pl.BlockSpec((b_grp, g_tile, n_tile), lambda i, j: (0, i, j)),
        ),
        compiler_params=pltpu.CompilerParams(
            dimension_semantics=("parallel", "parallel"), **compiler_params),
    )(x3d, mean, rstd)


# ---------------------------------------------------------------------------
# Wrapper: forward of the PyTorch `Normalization` module.
# ---------------------------------------------------------------------------
@functools.partial(jax.jit, static_argnames=("norm_type",))
def normalization_forward(x, norm_type="instance"):
    """x: [B, C, D, H, W] (real or complex). norm_type in {'none','instance','batch'}."""
    if jnp.iscomplexobj(x):
        # torch.complex(norm(real), norm(imag))
        # TODO(synk): fusing the complex de/re-interleave into the kernel would halve HBM
        # traffic on the complex path; kept as two real passes for simplicity.
        real = normalization_forward(x.real, norm_type=norm_type)
        imag = normalization_forward(x.imag, norm_type=norm_type)
        return jax.lax.complex(real, imag)

    if norm_type == "none":
        return x

    b, c, d, h, w = x.shape
    n = d * h * w

    if norm_type == "instance":
        # InstanceNorm3d(affine=False): per-(b, c) stats over D*H*W
        return _grouped_norm(x.reshape(1, b * c, n)).reshape(b, c, d, h, w)

    if norm_type == "batch":
        # BatchNorm3d(affine=False), training-mode forward: per-channel batch stats.
        # TODO(synk): running_mean/running_var (track_running_stats / eval mode) is module
        # state and is not modeled here.
        return _grouped_norm(x.reshape(b, c, n)).reshape(b, c, d, h, w)

    raise ValueError("Invalid normalization type: %s" % norm_type)


# ---------------------------------------------------------------------------
# Pure-JAX references for correctness checks.
# ---------------------------------------------------------------------------
def _instance_norm_ref(x, eps=_EPS):
    mean = jnp.mean(x, axis=(2, 3, 4), keepdims=True)
    var = jnp.mean((x - mean) ** 2, axis=(2, 3, 4), keepdims=True)
    return (x - mean) / jnp.sqrt(var + eps)


def _batch_norm_ref(x, eps=_EPS):
    mean = jnp.mean(x, axis=(0, 2, 3, 4), keepdims=True)
    var = jnp.mean((x - mean) ** 2, axis=(0, 2, 3, 4), keepdims=True)
    return (x - mean) / jnp.sqrt(var + eps)


if __name__ == "__main__":
    B, C, D, H, W = 2, 4, 8, 16, 16
    key = jax.random.PRNGKey(0)
    k0, k1, k2, k3 = jax.random.split(key, 4)
    x = jax.random.normal(k0, (B, C, D, H, W), jnp.float32)

    # instance norm (fused single-pass path)
    y_inst = jax.block_until_ready(normalization_forward(x, norm_type="instance"))
    assert y_inst.shape == x.shape
    assert jnp.max(jnp.abs(y_inst - _instance_norm_ref(x))) < 1e-3

    # batch norm (training-mode batch statistics, no transposes)
    y_bn = jax.block_until_ready(normalization_forward(x, norm_type="batch"))
    assert jnp.max(jnp.abs(y_bn - _batch_norm_ref(x))) < 1e-3

    # identity
    y_none = jax.block_until_ready(normalization_forward(x, norm_type="none"))
    assert jnp.max(jnp.abs(y_none - x)) == 0.0

    # complex input path: norm applied to real and imag parts independently
    xc = jax.lax.complex(x, jax.random.normal(k1, x.shape, jnp.float32))
    y_c = jax.block_until_ready(normalization_forward(xc, norm_type="instance"))
    ref_c = jax.lax.complex(_instance_norm_ref(xc.real), _instance_norm_ref(xc.imag))
    assert jnp.max(jnp.abs(y_c - ref_c)) < 1e-3

    # forced chunked-N two-pass path (tiny VMEM budget, N not a multiple of 128 -> masking)
    x_ck = jax.random.normal(k2, (1, 4, 5, 10, 30), jnp.float32)   # G=4, N=1500
    y_ck = jax.block_until_ready(
        _grouped_norm(x_ck.reshape(1, 4, 1500), workset_budget=64 * 1024)
    ).reshape(x_ck.shape)
    assert jnp.max(jnp.abs(y_ck - _instance_norm_ref(x_ck))) < 1e-3

    # forced partial-G boundary blocks in the single-pass path (G=20, g_tile=8)
    x_pg = jax.random.normal(k3, (1, 20, 4, 8, 8), jnp.float32)    # G=20, N=256
    y_pg = jax.block_until_ready(
        _grouped_norm(x_pg.reshape(1, 20, 256), workset_budget=64 * 1024)
    ).reshape(x_pg.shape)
    assert jnp.max(jnp.abs(y_pg - _instance_norm_ref(x_pg))) < 1e-3

    print("KERNEL_OK")
</pallas_src>

<mosaic_0001>
module attributes {stable_mosaic.version = 11 : i64} {
  func.func @_fused_norm_kernel(%arg0: i32, %arg1: memref<1x8x2048xf32, #tpu.memory_space<vmem>>, %arg2: memref<1x8x2048xf32, #tpu.memory_space<vmem>>) attributes {dimension_semantics = [#tpu.dimension_semantics<parallel>], iteration_bounds = array<i64: 1>, scalar_prefetch = 0 : i64, scratch_operands = 0 : i64, tpu.core_type = #tpu.core_type<tc>, window_params = [{transform_indices = @transform_0, window_bounds = array<i64: 1, 8, 2048>}, {transform_indices = @transform_1, window_bounds = array<i64: 1, 8, 2048>}]} {
    %c0 = arith.constant 0 : index
    %c0_0 = arith.constant 0 : index
    %c0_1 = arith.constant 0 : index
    %0 = vector.load %arg1[%c0, %c0_0, %c0_1] : memref<1x8x2048xf32, #tpu.memory_space<vmem>>, vector<1x8x2048xf32>
    %cst = arith.constant dense<0.000000e+00> : vector<1x8xf32>
    %1 = vector.multi_reduction <add>, %0, %cst [2] : vector<1x8x2048xf32> to vector<1x8xf32>
    %2 = vector.shape_cast %1 : vector<1x8xf32> to vector<1x8x1xf32>
    %cst_2 = arith.constant dense<0.000000e+00> : vector<8x1xf32>
    %3 = vector.multi_reduction <add>, %2, %cst_2 [0] : vector<1x8x1xf32> to vector<8x1xf32>
    %4 = vector.shape_cast %3 : vector<8x1xf32> to vector<1x8x1xf32>
    %cst_3 = arith.constant 4.8828125E-4 : f32
    %5 = vector.broadcast %cst_3 : f32 to vector<1x8x1xf32>
    %6 = arith.mulf %4, %5 : vector<1x8x1xf32>
    %7 = vector.broadcast %6 : vector<1x8x1xf32> to vector<1x8x2048xf32>
    %8 = arith.subf %0, %7 : vector<1x8x2048xf32>
    %9 = arith.mulf %8, %8 : vector<1x8x2048xf32>
    %cst_4 = arith.constant dense<0.000000e+00> : vector<1x8xf32>
    %10 = vector.multi_reduction <add>, %9, %cst_4 [2] : vector<1x8x2048xf32> to vector<1x8xf32>
    %11 = vector.shape_cast %10 : vector<1x8xf32> to vector<1x8x1xf32>
    %cst_5 = arith.constant dense<0.000000e+00> : vector<8x1xf32>
    %12 = vector.multi_reduction <add>, %11, %cst_5 [0] : vector<1x8x1xf32> to vector<8x1xf32>
    %13 = vector.shape_cast %12 : vector<8x1xf32> to vector<1x8x1xf32>
    %cst_6 = arith.constant 4.8828125E-4 : f32
    %14 = vector.broadcast %cst_6 : f32 to vector<1x8x1xf32>
    %15 = arith.mulf %13, %14 : vector<1x8x1xf32>
    %cst_7 = arith.constant 9.99999974E-6 : f32
    %16 = vector.broadcast %cst_7 : f32 to vector<1x8x1xf32>
    %17 = arith.addf %15, %16 : vector<1x8x1xf32>
    %18 = math.rsqrt %17 : vector<1x8x1xf32>
    %19 = vector.broadcast %18 : vector<1x8x1xf32> to vector<1x8x2048xf32>
    %20 = arith.mulf %8, %19 : vector<1x8x2048xf32>
    %c0_8 = arith.constant 0 : index
    %c0_9 = arith.constant 0 : index
    %c0_10 = arith.constant 0 : index
    %21 = vector.load %arg2[%c0_8, %c0_9, %c0_10] : memref<1x8x2048xf32, #tpu.memory_space<vmem>>, vector<1x8x2048xf32>
    tpu.vector_store %arg2[%c0_8, %c0_9, %c0_10], %20 {strides = array<i32>} : memref<1x8x2048xf32, #tpu.memory_space<vmem>>, vector<1x8x2048xf32>,
    return
  }
  func.func @transform_0(%arg0: i32) -> (i32, i32, i32) {
    %c0_i32 = arith.constant 0 : i32
    %c0_i32_0 = arith.constant 0 : i32
    %c0_i32_1 = arith.constant 0 : i32
    return %c0_i32, %arg0, %c0_i32_0 : i32, i32, i32
  }
  func.func @transform_1(%arg0: i32) -> (i32, i32, i32) {
    %c0_i32 = arith.constant 0 : i32
    %c0_i32_0 = arith.constant 0 : i32
    %c0_i32_1 = arith.constant 0 : i32
    return %c0_i32, %arg0, %c0_i32_0 : i32, i32, i32
  }
}

</mosaic_0001>

<bundles_post_ra>
// kernel: normalization_forward.1
= control target key start
LH: loop header
LB: loop body
LE: loop exit
PB: predicated region body
PF: predicated region fallthrough
CT: control target
= control target key end

     0   :  { %s240_s0 = inlined_call_operand.vmem [shape: f32[1,8,2048], index: 0, kind: input, shape index: {}]   ;;  %s241_s1 = inlined_call_operand.vmem [shape: f32[1,8,2048], index: 1, kind: output, shape index: {}]  }
   0x1   :  { %v8_v0 = vld [vmem:[%s240_s0] sm:$0xff]  ;;  %v9_v1 = vld [vmem:[%s240_s0 + $0x8] sm:$0xff]  ;;  %v10_v2 = vld [vmem:[%s240_s0 + $0x10] sm:$0xff] }
   0x2   :  { %v24_v3 = vadd.f32 %v9_v1, %v8_v0  ;;  %v11_v4 = vld [vmem:[%s240_s0 + $0x18] sm:$0xff]  ;;  %v12_v6 = vld [vmem:[%s240_s0 + $0x20] sm:$0xff]  ;;  %v13_v8 = vld [vmem:[%s240_s0 + $0x28] sm:$0xff] }
   0x3   :  { %v14_v10 = vld [vmem:[%s240_s0 + $0x30] sm:$0xff]  ;;  %v15_v12 = vld [vmem:[%s240_s0 + $0x38] sm:$0xff]  ;;  %v16_v14 = vld [vmem:[%s240_s0 + $0x40] sm:$0xff] }
   0x4   :  { %v25_v5 = vadd.f32 %v24_v3, %v10_v2  ;;  %v17_v16 = vld [vmem:[%s240_s0 + $0x48] sm:$0xff]  ;;  %v18_v18 = vld [vmem:[%s240_s0 + $0x50] sm:$0xff]  ;;  %v19_v20 = vld [vmem:[%s240_s0 + $0x58] sm:$0xff] }
   0x5   :  { %v20_v22 = vld [vmem:[%s240_s0 + $0x60] sm:$0xff]  ;;  %v21_v24 = vld [vmem:[%s240_s0 + $0x68] sm:$0xff]  ;;  %v22_v26 = vld [vmem:[%s240_s0 + $0x70] sm:$0xff] }
   0x6   :  { %v26_v7 = vadd.f32 %v25_v5, %v11_v4  ;;  %v23_v28 = vld [vmem:[%s240_s0 + $0x78] sm:$0xff] }
   0x8   :  { %v27_v9 = vadd.f32 %v26_v7, %v12_v6 }
   0xa   :  { %v28_v11 = vadd.f32 %v27_v9, %v13_v8 }
   0xc   :  { %v29_v13 = vadd.f32 %v28_v11, %v14_v10 }
   0xe   :  { %v30_v15 = vadd.f32 %v29_v13, %v15_v12 }
  0x10   :  { %v31_v17 = vadd.f32 %v30_v15, %v16_v14 }
  0x12   :  { %v32_v19 = vadd.f32 %v31_v17, %v17_v16 }
  0x14   :  { %v33_v21 = vadd.f32 %v32_v19, %v18_v18 }
  0x16   :  { %v34_v23 = vadd.f32 %v33_v21, %v19_v20 }
  0x18   :  { %v35_v25 = vadd.f32 %v34_v23, %v20_v22 }
  0x1a   :  { %v36_v27 = vadd.f32 %v35_v25, %v21_v24 }
  0x1c   :  { %v37_v29 = vadd.f32 %v36_v27, %v22_v26 }
  0x1e   :  { %v38_v30 = vadd.f32 %v37_v29, %v23_v28 }
  0x20   :  { %39 = vadd.xlane.f32.xlu0 %v38_v30 }
  0xad   :  { %v40_v31 = vpop.xlane.xlu0 %39 }
  0xae   :  { %v42_v32 = vmul.f32 0.00048828125, %v40_v31 }
  0xb0   :  { %v43_v33 = vsub.f32 %v8_v0, %v42_v32  ;;  %v44_v34 = vsub.f32 %v9_v1, %v42_v32  ;;  %v45_v35 = vsub.f32 %v10_v2, %v42_v32  ;;  %v46_v38 = vsub.f32 %v11_v4, %v42_v32 }
  0xb1   :  { %v47_v39 = vsub.f32 %v12_v6, %v42_v32  ;;  %v48_v42 = vsub.f32 %v13_v8, %v42_v32  ;;  %v49_v45 = vsub.f32 %v14_v10, %v42_v32  ;;  %v50_v48 = vsub.f32 %v15_v12, %v42_v32 }
  0xb2   :  { %v59_v36 = vmul.f32 %v43_v33, %v43_v33  ;;  %v60_v37 = vmul.f32 %v44_v34, %v44_v34  ;;  %v61_v40 = vmul.f32 %v45_v35, %v45_v35  ;;  %v62_v43 = vmul.f32 %v46_v38, %v46_v38 }
  0xb3   :  { %v63_v46 = vmul.f32 %v47_v39, %v47_v39  ;;  %v64_v49 = vmul.f32 %v48_v42, %v48_v42  ;;  %v51_v51 = vsub.f32 %v16_v14, %v42_v32  ;;  %v65_v52 = vmul.f32 %v49_v45, %v49_v45 }
  0xb4   :  { %v75_v41 = vadd.f32 %v60_v37, %v59_v36  ;;  %v52_v54 = vsub.f32 %v17_v16, %v42_v32  ;;  %v66_v55 = vmul.f32 %v50_v48, %v50_v48  ;;  %v53_v57 = vsub.f32 %v18_v18, %v42_v32 }
  0xb5   :  { %v67_v58 = vmul.f32 %v51_v51, %v51_v51  ;;  %v54_v60 = vsub.f32 %v19_v20, %v42_v32  ;;  %v55_v63 = vsub.f32 %v20_v22, %v42_v32  ;;  %v56_v2 = vsub.f32 %v21_v24, %v42_v32 }
  0xb6   :  { %v76_v44 = vadd.f32 %v75_v41, %v61_v40  ;;  %v68_v61 = vmul.f32 %v52_v54, %v52_v54  ;;  %v69_v0 = vmul.f32 %v53_v57, %v53_v57  ;;  %v57_v5 = vsub.f32 %v22_v26, %v42_v32 }
  0xb7   :  { %v70_v3 = vmul.f32 %v54_v60, %v54_v60  ;;  %v71_v6 = vmul.f32 %v55_v63, %v55_v63  ;;  %v58_v8 = vsub.f32 %v23_v28, %v42_v32  ;;  %v72_v9 = vmul.f32 %v56_v2, %v56_v2 }
  0xb8   :  { %v77_v47 = vadd.f32 %v76_v44, %v62_v43  ;;  %v73_v11 = vmul.f32 %v57_v5, %v57_v5 }
  0xb9   :  { %v74_v13 = vmul.f32 %v58_v8, %v58_v8 }
  0xba   :  { %v78_v50 = vadd.f32 %v77_v47, %v63_v46 }
  0xbc   :  { %v79_v53 = vadd.f32 %v78_v50, %v64_v49 }
  0xbe   :  { %v80_v56 = vadd.f32 %v79_v53, %v65_v52 }
  0xc0   :  { %v81_v59 = vadd.f32 %v80_v56, %v66_v55 }
  0xc2   :  { %v82_v62 = vadd.f32 %v81_v59, %v67_v58 }
  0xc4   :  { %v83_v1 = vadd.f32 %v82_v62, %v68_v61 }
  0xc6   :  { %v84_v4 = vadd.f32 %v83_v1, %v69_v0 }
  0xc8   :  { %v85_v7 = vadd.f32 %v84_v4, %v70_v3 }
  0xca   :  { %v86_v10 = vadd.f32 %v85_v7, %v71_v6 }
  0xcc   :  { %v87_v12 = vadd.f32 %v86_v10, %v72_v9 }
  0xce   :  { %v88_v14 = vadd.f32 %v87_v12, %v73_v11 }
  0xd0   :  { %v89_v15 = vadd.f32 %v88_v14, %v74_v13 }
  0xd2   :  { %90 = vadd.xlane.f32.xlu0 %v89_v15 }
 0x15f   :  { %v91_v16 = vpop.xlane.xlu0 %90 }
 0x160   :  { %v93_v17 = vmul.f32 0.00048828125, %v91_v16 }
 0x162   :  { %v94_v18 = vadd.f32 1e-05, %v93_v17 }
 0x164   :  { %132 = vrsqrt.f32 %v94_v18 }
 0x16e   :  { %v133_v19 = vpop.eup %132 }
 0x16f   :  { %v96_v20 = vmul.f32 %v133_v19, %v43_v33  ;;  %v97_v21 = vmul.f32 %v133_v19, %v44_v34  ;;  %v98_v22 = vmul.f32 %v133_v19, %v45_v35  ;;  %v99_v23 = vmul.f32 %v133_v19, %v46_v38 }
 0x170   :  { %v100_v24 = vmul.f32 %v133_v19, %v47_v39  ;;  %v101_v25 = vmul.f32 %v133_v19, %v48_v42  ;;  %v102_v26 = vmul.f32 %v133_v19, %v49_v45  ;;  %v103_v27 = vmul.f32 %v133_v19, %v50_v48 }
 0x171   :  { %v104_v28 = vmul.f32 %v133_v19, %v51_v51  ;;  %v105_v29 = vmul.f32 %v133_v19, %v52_v54  ;;  %v106_v30 = vmul.f32 %v133_v19, %v53_v57  ;;  %v107_v31 = vmul.f32 %v133_v19, %v54_v60  ;;  %112 = vst [vmem:[%s241_s1] sm:$0xff] %v96_v20 }
 0x172   :  { %113 = vst [vmem:[%s241_s1 + $0x8] sm:$0xff] %v97_v21  ;;  %114 = vst [vmem:[%s241_s1 + $0x10] sm:$0xff] %v98_v22  ;;  %v108_v32 = vmul.f32 %v133_v19, %v55_v63  ;;  %v109_v33 = vmul.f32 %v133_v19, %v56_v2  ;;  %v110_v34 = vmul.f32 %v133_v19, %v57_v5 }
 0x173   :  { %115 = vst [vmem:[%s241_s1 + $0x18] sm:$0xff] %v99_v23  ;;  %v111_v35 = vmul.f32 %v133_v19, %v58_v8  ;;  %116 = vst [vmem:[%s241_s1 + $0x20] sm:$0xff] %v100_v24 }
 0x174   :  { %117 = vst [vmem:[%s241_s1 + $0x28] sm:$0xff] %v101_v25  ;;  %118 = vst [vmem:[%s241_s1 + $0x30] sm:$0xff] %v102_v26 }
 0x175   :  { %119 = vst [vmem:[%s241_s1 + $0x38] sm:$0xff] %v103_v27  ;;  %120 = vst [vmem:[%s241_s1 + $0x40] sm:$0xff] %v104_v28 }
 0x176   :  { %121 = vst [vmem:[%s241_s1 + $0x48] sm:$0xff] %v105_v29  ;;  %122 = vst [vmem:[%s241_s1 + $0x50] sm:$0xff] %v106_v30 }
 0x177   :  { %123 = vst [vmem:[%s241_s1 + $0x58] sm:$0xff] %v107_v31  ;;  %124 = vst [vmem:[%s241_s1 + $0x60] sm:$0xff] %v108_v32 }
 0x178   :  { %125 = vst [vmem:[%s241_s1 + $0x68] sm:$0xff] %v109_v33  ;;  %126 = vst [vmem:[%s241_s1 + $0x70] sm:$0xff] %v110_v34 }
 0x179   :  { %127 = vst [vmem:[%s241_s1 + $0x78] sm:$0xff] %v111_v35 }

</bundles_post_ra>
